<compile_context>
chip_gen: v5e
topology: v5e:2x2
jax: 0.10.0
libtpu: 0.0.40
codegen_flags: <defaults>
</compile_context>

<pallas_src>
import functools

import numpy as np
import jax
import jax.numpy as jnp
from jax.experimental import pallas as pl
from jax.experimental.pallas import tpu as pltpu

_BIG = 1e30  # additive penalty for disallowed trellis transitions

# Whole-array-in-VMEM spec (no grid, single invocation).
_VMEM_SPEC = pl.BlockSpec(memory_space=pltpu.MemorySpace.VMEM)


# ----------------------------------------------------------------------------
# Trellis construction (same as the original create_transition_table helper):
# previous state of state s with input bit b is transition_table[s, b].
# ----------------------------------------------------------------------------
def create_transition_table(n_states: int) -> np.ndarray:
    return np.concatenate(
        [np.arange(n_states), np.arange(n_states)]).reshape(n_states, 2)


# ----------------------------------------------------------------------------
# Pallas kernels
# ----------------------------------------------------------------------------
def _priors_kernel(x_ref, p_ref, out_ref, *, hidden, n_states):
    """priors = relu(x @ W1.T + b1) @ W2.T + b2   (phase != 'val').

    p_ref packs [W2.T ; w1_row ; b1_row ; b2_row] into a single (H+3, max(H,S))
    slab so one DMA brings in all parameters.  Output must be (N, S) to match
    the module API; at toy N the kernel is entirely launch-bound.
    """
    H, S = hidden, n_states
    w2t = p_ref[0:H, 0:S]                      # (H, S)
    w1r = p_ref[H:H + 1, 0:H]                  # (1, H)
    b1r = p_ref[H + 1:H + 2, 0:H]              # (1, H)
    b2r = p_ref[H + 2:H + 3, 0:S]              # (1, S)
    h = jnp.maximum(x_ref[...] * w1r + b1r, 0.0)                       # (N, H)
    out_ref[...] = (
        jnp.dot(h, w2t, preferred_element_type=jnp.float32) + b2r)     # (N, S)


def _fused_val_kernel(xr_ref, xc_ref, p_ref, dec_ref, *, hidden, n_states):
    """Fused MLP-priors + sequential Viterbi ACS recursion (phase == 'val').

    xr_ref: (1, T) / xc_ref: (T, 1) -- first T flattened rx samples (the only
    ones the recursion consumes), in both tiny layouts.
    p_ref: packed parameter slab, see decode_val() for the layout.
    """
    T, C = dec_ref.shape
    H, S = hidden, n_states

    # ---- static slab views (zero-cost slices of one VMEM ref) ----
    w1_col = p_ref[0:H, 0:1]                              # (H, 1)
    b1_col = p_ref[0:H, 1:2]                              # (H, 1)
    w2     = p_ref[H:H + S, 0:H]                          # (S, H)
    b2_col = p_ref[H:H + S, H:H + 1]                      # (S, 1)
    pen    = p_ref[H:H + S, H + 1:H + 1 + S]              # (S, S)  pen[s, j]
    pen_t  = p_ref[H:H + S, H + 1 + S:H + 1 + 2 * S]      # (S, S)  pen_t[j, s]
    w1_row = p_ref[H + S:H + S + 1, 0:H]                  # (1, H)
    b1_row = p_ref[H + S + 1:H + S + 2, 0:H]              # (1, H)
    b2_row = p_ref[H + S + 2:H + S + 3, 0:S]              # (1, S)

    # ---- MLP priors (prologue, everything stays in vregs / VMEM) ----
    # (S, T) layout: states on sublanes, time on lanes (feeds odd/column steps)
    # -- the only MXU matmul in the kernel.
    h_sn = jnp.maximum(w1_col * xr_ref[...] + b1_col, 0.0)             # (H, T)
    pri_sn = (jnp.dot(w2, h_sn, preferred_element_type=jnp.float32)
              + b2_col)                                                 # (S, T)
    # (T, S) layout: time on sublanes, states on lanes (feeds even/row steps).
    # The S output channels are done as lane-reduction mul-adds on the VPU/XLU
    # instead of a second tiny MXU matmul (cheaper on v5e/v6e/v7x).
    h_ns = jnp.maximum(xc_ref[...] * w1_row + b1_row, 0.0)             # (T, H)
    iota_s_row = jax.lax.broadcasted_iota(jnp.int32, (1, S), 1)
    pri_ns = b2_row                                                     # (1, S)
    for s in range(S):
        col_s = jnp.sum(h_ns * w2[s:s + 1, :], axis=1, keepdims=True)  # (T, 1)
        pri_ns = pri_ns + col_s * (iota_s_row == s).astype(jnp.float32)  # (T, S)

    iota_s_col = jax.lax.broadcasted_iota(jnp.int32, (S, 1), 0)
    iota_cols = jax.lax.broadcasted_iota(jnp.int32, (1, C), 1)

    in_prob = jnp.zeros((1, S), jnp.float32)   # row at even steps, col at odd
    bits = jnp.zeros((1, C), jnp.float32)      # decoded bit per output column

    # Static unroll: T is a small compile-time constant here.
    # TODO(synk): for long T, switch to lax.fori_loop(..., unroll=True) over
    #   fused 2-step bodies and batch the argmin/bit extraction into one
    #   vectorized post-loop pass; for large n_states replace the (S,S)
    #   penalty broadcast+min with the butterfly pltpu.roll formulation.
    for i in range(T):
        if i % 2 == 0:
            # in_prob is a (1, S) row: states on lanes.
            mn = jnp.min(in_prob, axis=1, keepdims=True)               # (1, 1)
            idx = jnp.min(jnp.where(in_prob == mn, iota_s_row, S),
                          axis=1, keepdims=True)                       # first argmin
            bit = jnp.bitwise_and(idx, 1).astype(jnp.float32)          # argmin % 2
            bits = jnp.where(iota_cols == i, bit, bits)
            # Renormalize (reuses mn; keeps metrics bounded) and apply prior.
            tmp = (in_prob - mn) - pri_ns[i:i + 1, :]                  # (1, S)
            # out[s] = min_{j in pred(s)} tmp[j]  ->  (S, 1) column.
            in_prob = jnp.min(tmp + pen, axis=1, keepdims=True)
        else:
            # in_prob is an (S, 1) column: states on sublanes.
            mn = jnp.min(in_prob, axis=0, keepdims=True)               # (1, 1)
            idx = jnp.min(jnp.where(in_prob == mn, iota_s_col, S),
                          axis=0, keepdims=True)
            bit = jnp.bitwise_and(idx, 1).astype(jnp.float32)
            bits = jnp.where(iota_cols == i, bit, bits)
            tmp = (in_prob - mn) - pri_sn[:, i:i + 1]                  # (S, 1)
            # out[s] = min_{j in pred(s)} tmp[j]  ->  (1, S) row.
            in_prob = jnp.min(tmp + pen_t, axis=0, keepdims=True)

    # Single dense lane-dense store; columns >= T keep the original zero fill.
    dec_ref[...] = jnp.broadcast_to(bits, (T, C))


# ----------------------------------------------------------------------------
# pallas_call wrappers
# ----------------------------------------------------------------------------
def compute_priors(x, w1, b1, w2, b2):
    N = x.shape[0]
    H, S = w1.shape[0], w2.shape[0]
    W = max(H, S)
    # Pack all parameters into one slab -> 2 input refs total.
    slab = jnp.zeros((H + 3, W), jnp.float32)
    slab = slab.at[0:H, 0:S].set(w2.T.astype(jnp.float32))
    slab = slab.at[H, 0:H].set(w1.reshape(H).astype(jnp.float32))
    slab = slab.at[H + 1, 0:H].set(b1.reshape(H).astype(jnp.float32))
    slab = slab.at[H + 2, 0:S].set(b2.reshape(S).astype(jnp.float32))
    # TODO(synk): for production N, tile over sample blocks (grid axis marked
    #   "parallel" so v7x's 2 TensorCores are both used), use a lane-dense
    #   sample layout / >=512-row blocks to avoid masked vst, and budget
    #   vmem_limit_bytes against v7x's 64 MiB VMEM.
    kernel = functools.partial(_priors_kernel, hidden=H, n_states=S)
    return pl.pallas_call(
        kernel,
        in_specs=[_VMEM_SPEC, _VMEM_SPEC],
        out_specs=_VMEM_SPEC,
        out_shape=jax.ShapeDtypeStruct((N, S), jnp.float32),
    )(x.astype(jnp.float32), slab)


def decode_val(rx, w1, b1, w2, b2, penalty, penalty_t):
    T, C = rx.shape
    # The torch reference writes decoded_word[:, i] for i in range(T); it is
    # only well-defined when T <= C.
    assert T <= C, "decode_val requires rx.shape[0] <= rx.shape[1]"
    H, S = w1.shape[0], w2.shape[0]

    x_first = rx.reshape(-1)[:T].astype(jnp.float32)  # only samples the ACS uses
    xr = x_first.reshape(1, T)
    xc = x_first.reshape(T, 1)

    # Packed parameter slab (rows x cols):
    #   rows 0..H-1   : col 0 = w1_col, col 1 = b1_col
    #   rows H..H+S-1 : [ w2 | b2_col | pen | pen_t ]
    #   row  H+S      : w1_row
    #   row  H+S+1    : b1_row
    #   row  H+S+2    : b2_row
    NR, NC = H + S + 3, H + 1 + 2 * S
    slab = jnp.zeros((NR, NC), jnp.float32)
    slab = slab.at[0:H, 0:1].set(w1.reshape(H, 1).astype(jnp.float32))
    slab = slab.at[0:H, 1:2].set(b1.reshape(H, 1).astype(jnp.float32))
    slab = slab.at[H:H + S, 0:H].set(w2.astype(jnp.float32))
    slab = slab.at[H:H + S, H:H + 1].set(b2.reshape(S, 1).astype(jnp.float32))
    slab = slab.at[H:H + S, H + 1:H + 1 + S].set(penalty)
    slab = slab.at[H:H + S, H + 1 + S:H + 1 + 2 * S].set(penalty_t)
    slab = slab.at[H + S, 0:H].set(w1.reshape(H).astype(jnp.float32))
    slab = slab.at[H + S + 1, 0:H].set(b1.reshape(H).astype(jnp.float32))
    slab = slab.at[H + S + 2, 0:S].set(b2.reshape(S).astype(jnp.float32))

    kernel = functools.partial(_fused_val_kernel, hidden=H, n_states=S)
    return pl.pallas_call(
        kernel,
        in_specs=[_VMEM_SPEC, _VMEM_SPEC, _VMEM_SPEC],
        out_specs=_VMEM_SPEC,
        out_shape=jax.ShapeDtypeStruct((T, C), jnp.float32),
    )(xr, xc, slab)


# ----------------------------------------------------------------------------
# Module equivalent
# ----------------------------------------------------------------------------
class MetaViterbiNetDetector:
    def __init__(self, n_states: int):
        self.n_states = n_states
        self.transition_table_array = create_transition_table(n_states)
        # Additive penalty: 0 where transition is allowed, BIG elsewhere.
        pen = np.full((n_states, n_states), _BIG, np.float32)
        for s in range(n_states):
            pen[s, self.transition_table_array[s, 0]] = 0.0
            pen[s, self.transition_table_array[s, 1]] = 0.0
        self.penalty = jnp.asarray(pen)
        self.penalty_t = jnp.asarray(pen.T)

    def forward(self, rx, phase: str, var):
        w1, b1, w2, b2 = var
        rx = rx.astype(jnp.float32)
        if phase == 'val':
            return decode_val(rx, w1, b1, w2, b2, self.penalty, self.penalty_t)
        x = rx.reshape(-1, 1)                                # (N, 1)
        return compute_priors(x, w1, b1, w2, b2)             # (N, n_states)


# ----------------------------------------------------------------------------
# Pure-JAX / numpy references (for self-check only)
# ----------------------------------------------------------------------------
def reference_priors(rx, var):
    w1, b1, w2, b2 = var
    x = rx.reshape(-1, 1)
    h = jnp.maximum(x @ w1.T + b1, 0.0)
    return h @ w2.T + b2


def reference_viterbi(priors_np, rx_shape, transition_table, n_states):
    T, C = rx_shape
    dec = np.zeros(rx_shape, np.float32)
    in_p = np.zeros((n_states,), np.float32)
    for i in range(T):
        dec[:, i] = int(np.argmin(in_p)) % 2
        tmp = in_p - priors_np[i]
        in_p = np.min(tmp[transition_table], axis=1)
    return dec


# ----------------------------------------------------------------------------
if __name__ == "__main__":
    n_states = 4
    hidden = 32
    T, C = 8, 8                       # rx shape; ACS loop runs over rx.shape[0]

    key = jax.random.PRNGKey(0)
    k_rx, k_w1, k_b1, k_w2, k_b2 = jax.random.split(key, 5)
    rx = jax.random.normal(k_rx, (T, C), dtype=jnp.float32)
    # var = [W1, b1, W2, b2] with torch F.linear conventions.
    w1 = 0.5 * jax.random.normal(k_w1, (hidden, 1), dtype=jnp.float32)
    b1 = 0.1 * jax.random.normal(k_b1, (hidden,), dtype=jnp.float32)
    w2 = 0.5 * jax.random.normal(k_w2, (n_states, hidden), dtype=jnp.float32)
    b2 = 0.1 * jax.random.normal(k_b2, (n_states,), dtype=jnp.float32)
    var = [w1, b1, w2, b2]

    det = MetaViterbiNetDetector(n_states)

    # phase != 'val' -> priors
    priors = det.forward(rx, 'train', var)
    jax.block_until_ready(priors)

    # phase == 'val' -> Viterbi-decoded word (single fused kernel)
    decoded = det.forward(rx, 'val', var)
    jax.block_until_ready(decoded)

    # Self-check against references.
    priors_ref = reference_priors(rx, var)
    assert priors.shape == (T * C, n_states)
    assert np.allclose(np.asarray(priors), np.asarray(priors_ref),
                       rtol=2e-3, atol=2e-3)

    dec_ref = reference_viterbi(np.asarray(priors), (T, C),
                                det.transition_table_array, n_states)
    assert decoded.shape == (T, C)
    assert np.allclose(np.asarray(decoded), dec_ref)

    print("KERNEL_OK")
</pallas_src>

<mosaic_0001>
module attributes {stable_mosaic.version = 11 : i64} {
  func.func @_priors_kernel(%arg0: memref<64x1xf32, #tpu.memory_space<vmem>>, %arg1: memref<35x32xf32, #tpu.memory_space<vmem>>, %arg2: memref<64x4xf32, #tpu.memory_space<vmem>>) attributes {dimension_semantics = [], scalar_prefetch = 0 : i64, scratch_operands = 0 : i64, tpu.core_type = #tpu.core_type<tc>} {
    %c0 = arith.constant 0 : index
    %c0_0 = arith.constant 0 : index
    %0 = vector.load %arg1[%c0, %c0_0] : memref<35x32xf32, #tpu.memory_space<vmem>>, vector<32x4xf32>
    %c32 = arith.constant 32 : index
    %c0_1 = arith.constant 0 : index
    %1 = vector.load %arg1[%c32, %c0_1] : memref<35x32xf32, #tpu.memory_space<vmem>>, vector<1x32xf32>
    %c33 = arith.constant 33 : index
    %c0_2 = arith.constant 0 : index
    %2 = vector.load %arg1[%c33, %c0_2] : memref<35x32xf32, #tpu.memory_space<vmem>>, vector<1x32xf32>
    %c34 = arith.constant 34 : index
    %c0_3 = arith.constant 0 : index
    %3 = vector.load %arg1[%c34, %c0_3] : memref<35x32xf32, #tpu.memory_space<vmem>>, vector<1x4xf32>
    %c0_4 = arith.constant 0 : index
    %c0_5 = arith.constant 0 : index
    %4 = vector.load %arg0[%c0_4, %c0_5] : memref<64x1xf32, #tpu.memory_space<vmem>>, vector<64x1xf32>
    %5 = vector.broadcast %4 : vector<64x1xf32> to vector<64x32xf32>
    %6 = vector.broadcast %1 : vector<1x32xf32> to vector<64x32xf32>
    %7 = arith.mulf %5, %6 : vector<64x32xf32>
    %8 = vector.broadcast %2 : vector<1x32xf32> to vector<64x32xf32>
    %9 = arith.addf %7, %8 : vector<64x32xf32>
    %cst = arith.constant 0.000000e+00 : f32
    %10 = vector.broadcast %cst : f32 to vector<64x32xf32>
    %11 = arith.maximumf %9, %10 : vector<64x32xf32>
    %cst_6 = arith.constant dense<0.000000e+00> : vector<64x4xf32>
    %12 = tpu.matmul %11, %0, %cst_6 {dimension_numbers = #tpu.dot_dimension_numbers<[1], [0], [0], [1], [0, 0, 1, 1], [], []>} : vector<64x32xf32>, vector<32x4xf32>, vector<64x4xf32> -> vector<64x4xf32>
    %13 = vector.broadcast %3 : vector<1x4xf32> to vector<64x4xf32>
    %14 = arith.addf %12, %13 : vector<64x4xf32>
    %c0_7 = arith.constant 0 : index
    %c0_8 = arith.constant 0 : index
    %15 = vector.load %arg2[%c0_7, %c0_8] : memref<64x4xf32, #tpu.memory_space<vmem>>, vector<64x4xf32>
    tpu.vector_store %arg2[%c0_7, %c0_8], %14 {strides = array<i32>} : memref<64x4xf32, #tpu.memory_space<vmem>>, vector<64x4xf32>,
    return
  }
}

</mosaic_0001>

<bundles_post_ra>
// kernel: tpu_custom_call.1
= control target key start
LH: loop header
LB: loop body
LE: loop exit
PB: predicated region body
PF: predicated region fallthrough
CT: control target
= control target key end

     0   :  { %v199_v0 = vmov 0   ;;  %vm93_vm0 = vcmask 261120   ;;  %vm159_vm1 = vcmask 31744   ;;  %s300_s0 = inlined_call_operand.vmem [shape: f32[64,1], index: 0, kind: input, shape index: {}]   ;;  %s301_s1 = inlined_call_operand.vmem [shape: f32[35,32], index: 1, kind: input, shape index: {}]   ;;  %s302_s2 = inlined_call_operand.vmem [shape: f32[64,4], index: 2, kind: output, shape index: {}]  }
   0x1   :  { %194 = vset.pattern.permute.xlu1 %v199_v0  ;;  %193 = vset.pattern.permute.xlu0 %v199_v0  ;;  %v22_v1 = vld [vmem:[%s300_s0 + $0x20] sm:$0xff]  ;;  %v23_v3 = vld [vmem:[%s300_s0 + $0x28] sm:$0xff]  ;;  %v14_v4 = vld [vmem:[%s301_s1 + $0x18] sm:$0xff] }
   0x2   :  { %v18_v2 = vld [vmem:[%s300_s0] sm:$0xff]  ;;  %48 = vperm.xlu0 %193, %v22_v1   ;;  %195 = vset.pattern.permute.xlu2 %v199_v0  ;;  %v24_v5 = vld [vmem:[%s300_s0 + $0x30] sm:$0xff]  ;;  %v25_v7 = vld [vmem:[%s300_s0 + $0x38] sm:$0xff] }
   0x3   :  { %28 = vperm.xlu1 %194, %v18_v2   ;;  %53 = vperm.xlu2 %195, %v23_v3   ;;  %v20_v6 = vld [vmem:[%s300_s0 + $0x10] sm:$0xff]  ;;  %v19_v8 = vld [vmem:[%s300_s0 + $0x8] sm:$0xff]  ;;  %v21_v9 = vld [vmem:[%s300_s0 + $0x18] sm:$0xff] }
   0x4   :  { %181 = vmatpush.msra.mxu2 %v14_v4  ;;  %130 = vmatpush.msra.mxu0 %v14_v4  ;;  %v13_v10 = vld [vmem:[%s301_s1 + $0x10] sm:$0xff]  ;;  %v12_v11 = vld [vmem:[%s301_s1 + $0x8] sm:$0xff]  ;;  %v11_v12 = vld [vmem:[%s301_s1] sm:$0xff] }
   0x5   :  { %180 = vmatpush.msra.mxu1 %v14_v4  ;;  %182 = vmatpush.msra.mxu3 %v14_v4  ;;  %v196_v13 = vld [vmem:[%s301_s1 + $0x20] ss:$0 sm:$0xff]  ;;  %v197_v14 = vld [vmem:[%s301_s1 + $0x21] ss:$0 sm:$0xff]  ;;  %v198_v47 = vld [vmem:[%s301_s1 + $0x22] ss:$0 sm:$0xff] }
   0x6   :  { %184 = vmatpush.msra.mxu2 %v13_v10  ;;  %131 = vmatpush.msra.mxu0 %v13_v10 }
   0x7   :  { %183 = vmatpush.msra.mxu1 %v13_v10  ;;  %185 = vmatpush.msra.mxu3 %v13_v10 }
   0x8   :  { %187 = vmatpush.msra.mxu2 %v12_v11  ;;  %132 = vmatpush.msra.mxu0 %v12_v11 }
   0x9   :  { %186 = vmatpush.msra.mxu1 %v12_v11  ;;  %188 = vmatpush.msra.mxu3 %v12_v11 }
   0xa   :  { %58 = vperm.xlu0 %193, %v24_v5   ;;  %190 = vmatpush.msra.mxu2 %v11_v12 }
   0xb   :  { %38 = vperm.xlu1 %194, %v20_v6   ;;  %63 = vperm.xlu2 %195, %v25_v7  }
   0xc   :  { %133 = vmatpush.msra.mxu0 %v11_v12  ;;  %189 = vmatpush.msra.mxu1 %v11_v12 }
   0xd   :  { %191 = vmatpush.msra.mxu3 %v11_v12 }
  0x12   :  { %33 = vperm.xlu0 %193, %v19_v8  }
  0x13   :  { %43 = vperm.xlu1 %194, %v21_v9  }
  0x5d   :  { %v54_v17 = vpop.permute.xlu2 %53 }
  0x5e   :  { %v72_v20 = vmul.f32 %v196_v13, %v54_v17 }
  0x60   :  { %v81_v25 = vadd.f32 %v197_v14, %v72_v20 }
  0x62   :  { %v89_v30 = vmax.f32 %v81_v25, 0.0 }
  0x65   :  { %v64_v31 = vpop.permute.xlu2 %63 }
  0x66   :  { %v74_v36 = vmul.f32 %v196_v13, %v64_v31 }
  0x68   :  { %v83_v41 = vadd.f32 %v197_v14, %v74_v36 }
  0x6a   :  { %v91_v46 = vmax.f32 %v83_v41, 0.0 }
  0x74   :  { %v49_v15 = vpop.permute.xlu0 %48 }
  0x75   :  { %v29_v16 = vpop.permute.xlu1 %28  ;;  %v71_v18 = vmul.f32 %v196_v13, %v49_v15 }
  0x76   :  { %v67_v19 = vmul.f32 %v196_v13, %v29_v16 }
  0x77   :  { %v80_v21 = vadd.f32 %v197_v14, %v71_v18 }
  0x78   :  { %v76_v22 = vadd.f32 %v197_v14, %v67_v19 }
  0x79   :  { %v88_v23 = vmax.f32 %v80_v21, 0.0 }
  0x7a   :  { %v84_v24 = vmax.f32 %v76_v22, 0.0 }
  0x7b   :  { %176 = vmatmul.msk.f32.vlgmr.msra.gmra.mxu2 %vm93_vm0, %v88_v23 }
  0x7c   :  { %172 = vmatmul.msk.f32.vlgmr.msra.gmra.mxu0 %vm93_vm0, %v84_v24  ;;  %v59_v26 = vpop.permute.xlu0 %58 }
  0x7d   :  { %v39_v27 = vpop.permute.xlu1 %38  ;;  %v73_v28 = vmul.f32 %v196_v13, %v59_v26 }
  0x7e   :  { %v69_v29 = vmul.f32 %v196_v13, %v39_v27 }
  0x7f   :  { %v82_v32 = vadd.f32 %v197_v14, %v73_v28 }
  0x80   :  { %v78_v33 = vadd.f32 %v197_v14, %v69_v29 }
  0x81   :  { %v90_v34 = vmax.f32 %v82_v32, 0.0 }
  0x82   :  { %v86_v35 = vmax.f32 %v78_v33, 0.0 }
  0x83   :  { %177 = vmatmul.msk.f32.gmra.mxu2 %vm93_vm0, %v89_v30  ;;  %178 = vmatmul.msk.f32.vlgmr.msra.gmra.mxu3 %vm93_vm0, %v90_v34 }
  0x84   :  { %174 = vmatmul.msk.f32.vlgmr.msra.gmra.mxu1 %vm93_vm0, %v86_v35  ;;  %v34_v37 = vpop.permute.xlu0 %33 }
  0x85   :  { %v44_v38 = vpop.permute.xlu1 %43  ;;  %v68_v39 = vmul.f32 %v196_v13, %v34_v37 }
  0x86   :  { %v70_v40 = vmul.f32 %v196_v13, %v44_v38 }
  0x87   :  { %v77_v42 = vadd.f32 %v197_v14, %v68_v39 }
  0x88   :  { %v79_v43 = vadd.f32 %v197_v14, %v70_v40 }
  0x89   :  { %v85_v44 = vmax.f32 %v77_v42, 0.0 }
  0x8a   :  { %v87_v45 = vmax.f32 %v79_v43, 0.0 }
  0x8b   :  { %173 = vmatmul.msk.f32.gmra.mxu0 %vm93_vm0, %v85_v44  ;;  %179 = vmatmul.msk.f32.gmra.mxu3 %vm93_vm0, %v91_v46 }
  0x8c   :  { %175 = vmatmul.msk.f32.gmra.mxu1 %vm93_vm0, %v87_v45 }
  0xf9   :  { %v135_v48 = vpop.f32.mrf.mxu0 }
  0xfa   :  { %v136_v49 = vadd.f32 %v198_v47, %v135_v48 }
  0xfc   :  { %160 = vst.msk [vmem:[%s302_s2] sm:$0xff] %vm159_vm1, %v136_v49 }
  0xfe   :  { %v147_v50 = vpop.f32.mrf.mxu2 }
  0xff   :  { %v148_v51 = vadd.f32 %v198_v47, %v147_v50 }
 0x101   :  { %v141_v52 = vpop.f32.mrf.mxu1  ;;  %164 = vst.msk [vmem:[%s302_s2 + $0x20] sm:$0xff] %vm159_vm1, %v148_v51 }
 0x102   :  { %v142_v53 = vadd.f32 %v198_v47, %v141_v52 }
 0x104   :  { %162 = vst.msk [vmem:[%s302_s2 + $0x10] sm:$0xff] %vm159_vm1, %v142_v53 }
 0x106   :  { %v150_v54 = vpop.f32.mrf.mxu2  ;;  %v153_v56 = vpop.f32.mrf.mxu3 }
 0x107   :  { %v151_v55 = vadd.f32 %v198_v47, %v150_v54  ;;  %v154_v57 = vadd.f32 %v198_v47, %v153_v56 }
 0x108   :  { %v138_v58 = vpop.f32.mrf.mxu0 }
 0x109   :  { %v144_v59 = vpop.f32.mrf.mxu1  ;;  %165 = vst.msk [vmem:[%s302_s2 + $0x28] sm:$0xff] %vm159_vm1, %v151_v55  ;;  %v139_v60 = vadd.f32 %v198_v47, %v138_v58 }
 0x10a   :  { %v145_v61 = vadd.f32 %v198_v47, %v144_v59  ;;  %166 = vst.msk [vmem:[%s302_s2 + $0x30] sm:$0xff] %vm159_vm1, %v154_v57 }
 0x10b   :  { %161 = vst.msk [vmem:[%s302_s2 + $0x8] sm:$0xff] %vm159_vm1, %v139_v60 }
 0x10c   :  { %163 = vst.msk [vmem:[%s302_s2 + $0x18] sm:$0xff] %vm159_vm1, %v145_v61 }
 0x10e   :  { %v156_v62 = vpop.f32.mrf.mxu3 }
 0x10f   :  { %v157_v63 = vadd.f32 %v198_v47, %v156_v62 }
 0x111   :  { %167 = vst.msk [vmem:[%s302_s2 + $0x38] sm:$0xff] %vm159_vm1, %v157_v63 }

</bundles_post_ra>
